<compile_context>
chip_gen: v7x
topology: tpu7x:2x2x1
jax: 0.10.0
libtpu: 0.0.40
codegen_flags: <defaults>
</compile_context>

<pallas_src>
import math

import jax
import jax.numpy as jnp
from jax import lax
from jax.experimental import pallas as pl
from jax.experimental.pallas import tpu as pltpu


def _vit_mae_attn_kernel(x_ref, wq_ref, wk_ref, wv_ref,
                         bq_ref, bk_ref, bv_ref, o_ref):
    """One grid step = one (batch, head) pair.

    x_ref : (1, S, E)    hidden states for this batch element (f32)
    wq/wk/wv_ref : (1, E, D)   per-head projection weights (bf16)
    bq/bk/bv_ref : (1, 1, D)   per-head projection biases (f32)
    o_ref : (1, 1, S, D)       this head's context output
    """
    head_dim = wq_ref.shape[-1]
    scale = 1.0 / math.sqrt(head_dim)

    x = x_ref[0].astype(jnp.bfloat16)                 # (S, E) bf16 MXU input

    # Per-head QKV projection: three (S,E) x (E,D) matmuls, fp32 accumulation.
    q = jnp.dot(x, wq_ref[0], preferred_element_type=jnp.float32) + bq_ref[0]
    k = jnp.dot(x, wk_ref[0], preferred_element_type=jnp.float32) + bk_ref[0]
    v = jnp.dot(x, wv_ref[0], preferred_element_type=jnp.float32) + bv_ref[0]

    # Scores: q @ k^T without materializing the transpose (trans_b contraction).
    s = lax.dot_general(
        q.astype(jnp.bfloat16), k.astype(jnp.bfloat16),
        dimension_numbers=(((1,), (1,)), ((), ())),
        preferred_element_type=jnp.float32) * scale   # (S, S) f32

    # Numerically-stable softmax over keys, in fp32.
    s = s - jnp.max(s, axis=-1, keepdims=True)
    p = jnp.exp(s)
    p = p * pl.reciprocal(jnp.sum(p, axis=-1, keepdims=True), approx=True)

    # Context: probs @ V, bf16 MXU inputs, fp32 accumulation.
    ctx = jnp.dot(p.astype(jnp.bfloat16), v.astype(jnp.bfloat16),
                  preferred_element_type=jnp.float32)  # (S, D)

    o_ref[0, 0] = ctx.astype(o_ref.dtype)


def vit_mae_self_flash_attention(hidden_states, qkv_weight, qkv_bias, *,
                                 num_heads):
    """Pallas wrapper.

    hidden_states: (B, S, E) float32
    qkv_weight   : (3E, E)   float32   (PyTorch nn.Linear layout, rows packed
                                        as [q | k | v], each head-major H*D)
    qkv_bias     : (3E,)     float32
    """
    B, S, E = hidden_states.shape
    D = E // num_heads
    H = num_heads

    # Host-side weight repack (would normally be done once at load time):
    # (3E, E) -> (3, H, D, E) -> (3, H, E, D), bf16 for MXU / VMEM footprint.
    w = jnp.transpose(qkv_weight.reshape(3, H, D, E), (0, 1, 3, 2))
    wq = w[0].astype(jnp.bfloat16)     # (H, E, D)
    wk = w[1].astype(jnp.bfloat16)
    wv = w[2].astype(jnp.bfloat16)
    b = qkv_bias.reshape(3, H, 1, D).astype(jnp.float32)
    bq, bk, bv = b[0], b[1], b[2]      # (H, 1, D) each

    grid = (B, H)   # head axis innermost: x block reused across heads (1 DMA
                    # per batch element), tiny per-head weight tiles re-fetched.

    out4 = pl.pallas_call(
        _vit_mae_attn_kernel,
        out_shape=jax.ShapeDtypeStruct((B, H, S, D), hidden_states.dtype),
        grid_spec=pltpu.PrefetchScalarGridSpec(
            num_scalar_prefetch=0,
            grid=grid,
            in_specs=[
                pl.BlockSpec((1, S, E), lambda b_, h_: (b_, 0, 0)),
                pl.BlockSpec((1, E, D), lambda b_, h_: (h_, 0, 0)),
                pl.BlockSpec((1, E, D), lambda b_, h_: (h_, 0, 0)),
                pl.BlockSpec((1, E, D), lambda b_, h_: (h_, 0, 0)),
                pl.BlockSpec((1, 1, D), lambda b_, h_: (h_, 0, 0)),
                pl.BlockSpec((1, 1, D), lambda b_, h_: (h_, 0, 0)),
                pl.BlockSpec((1, 1, D), lambda b_, h_: (h_, 0, 0)),
            ],
            out_specs=pl.BlockSpec((1, 1, S, D),
                                   lambda b_, h_: (b_, h_, 0, 0)),
        ),
        compiler_params=pltpu.CompilerParams(
            dimension_semantics=("parallel", "parallel")),
    )(hidden_states, wq, wk, wv, bq, bk, bv)

    # Layout plumbing back to the module's (B, S, H*D) contract.
    return out4.transpose(0, 2, 1, 3).reshape(B, S, E)


def _reference(hidden_states, qkv_weight, qkv_bias, *, num_heads):
    """Pure-JAX fp32 reference matching the PyTorch forward (fast path)."""
    B, S, E = hidden_states.shape
    D = E // num_heads
    qkv = hidden_states @ qkv_weight.T + qkv_bias            # (B, S, 3E)
    qkv = qkv.reshape(B, S, 3, num_heads, D)
    q, k, v = qkv[:, :, 0], qkv[:, :, 1], qkv[:, :, 2]        # (B, S, H, D)
    q = q.transpose(0, 2, 1, 3)                               # (B, H, S, D)
    k = k.transpose(0, 2, 1, 3)
    v = v.transpose(0, 2, 1, 3)
    scores = jnp.einsum('bhqd,bhkd->bhqk', q, k) / math.sqrt(D)
    probs = jax.nn.softmax(scores, axis=-1)
    ctx = jnp.einsum('bhqk,bhkd->bhqd', probs, v)             # (B, H, S, D)
    return ctx.transpose(0, 2, 1, 3).reshape(B, S, E)


if __name__ == "__main__":
    # Small config consistent with the module; head_dim=64 matches real
    # ViT-MAE heads (keeps slices lane-friendly): hidden=128, heads=2,
    # seq=16, batch=2.
    B, S, E, H = 2, 16, 128, 2

    key = jax.random.PRNGKey(0)
    k_x, k_w, k_b = jax.random.split(key, 3)

    hidden_states = jax.random.normal(k_x, (B, S, E), dtype=jnp.float32)
    # Synthetic deterministic params mimicking nn.Linear(hidden, 3*hidden).
    qkv_weight = 0.02 * jax.random.normal(k_w, (3 * E, E), dtype=jnp.float32)
    qkv_bias = 0.01 * jax.random.normal(k_b, (3 * E,), dtype=jnp.float32)

    out = vit_mae_self_flash_attention(hidden_states, qkv_weight, qkv_bias,
                                       num_heads=H)
    out = jax.block_until_ready(out)

    ref = _reference(hidden_states, qkv_weight, qkv_bias, num_heads=H)
    assert out.shape == (B, S, E)
    # bf16 MXU inputs with fp32 accumulation (autocast-style): loose tolerance.
    max_err = float(jnp.max(jnp.abs(out - ref)))
    assert jnp.allclose(out, ref, atol=1e-2, rtol=1e-2), max_err

    print("KERNEL_OK")
</pallas_src>

<mosaic_0001>
module attributes {stable_mosaic.version = 11 : i64} {
  func.func @_vit_mae_attn_kernel(%arg0: i32, %arg1: i32, %arg2: memref<1x16x128xf32, #tpu.memory_space<vmem>>, %arg3: memref<1x128x64xbf16, #tpu.memory_space<vmem>>, %arg4: memref<1x128x64xbf16, #tpu.memory_space<vmem>>, %arg5: memref<1x128x64xbf16, #tpu.memory_space<vmem>>, %arg6: memref<1x1x64xf32, #tpu.memory_space<vmem>>, %arg7: memref<1x1x64xf32, #tpu.memory_space<vmem>>, %arg8: memref<1x1x64xf32, #tpu.memory_space<vmem>>, %arg9: memref<1x1x16x64xf32, #tpu.memory_space<vmem>>) attributes {dimension_semantics = [#tpu.dimension_semantics<parallel>, #tpu.dimension_semantics<parallel>], iteration_bounds = array<i64: 2, 2>, scalar_prefetch = 0 : i64, scratch_operands = 0 : i64, tpu.core_type = #tpu.core_type<tc>, window_params = [{transform_indices = @transform_0, window_bounds = array<i64: 1, 16, 128>}, {transform_indices = @transform_1, window_bounds = array<i64: 1, 128, 64>}, {transform_indices = @transform_2, window_bounds = array<i64: 1, 128, 64>}, {transform_indices = @transform_3, window_bounds = array<i64: 1, 128, 64>}, {transform_indices = @transform_4, window_bounds = array<i64: 1, 1, 64>}, {transform_indices = @transform_5, window_bounds = array<i64: 1, 1, 64>}, {transform_indices = @transform_6, window_bounds = array<i64: 1, 1, 64>}, {transform_indices = @transform_7, window_bounds = array<i64: 1, 1, 16, 64>}]} {
    %c0 = arith.constant 0 : index
    %c0_0 = arith.constant 0 : index
    %c0_1 = arith.constant 0 : index
    %0 = vector.load %arg2[%c0, %c0_0, %c0_1] : memref<1x16x128xf32, #tpu.memory_space<vmem>>, vector<1x16x128xf32>
    %1 = vector.shape_cast %0 : vector<1x16x128xf32> to vector<16x128xf32>
    %2 = arith.truncf %1 : vector<16x128xf32> to vector<16x128xbf16>
    %c0_2 = arith.constant 0 : index
    %c0_3 = arith.constant 0 : index
    %c0_4 = arith.constant 0 : index
    %3 = vector.load %arg3[%c0_2, %c0_3, %c0_4] : memref<1x128x64xbf16, #tpu.memory_space<vmem>>, vector<1x128x64xbf16>
    %4 = vector.shape_cast %3 : vector<1x128x64xbf16> to vector<128x64xbf16>
    %cst = arith.constant dense<0.000000e+00> : vector<16x64xf32>
    %5 = tpu.matmul %2, %4, %cst {dimension_numbers = #tpu.dot_dimension_numbers<[1], [0], [0], [1], [0, 0, 1, 1], [], []>} : vector<16x128xbf16>, vector<128x64xbf16>, vector<16x64xf32> -> vector<16x64xf32>
    %c0_5 = arith.constant 0 : index
    %c0_6 = arith.constant 0 : index
    %c0_7 = arith.constant 0 : index
    %6 = vector.load %arg6[%c0_5, %c0_6, %c0_7] : memref<1x1x64xf32, #tpu.memory_space<vmem>>, vector<1x1x64xf32>
    %7 = vector.shape_cast %6 : vector<1x1x64xf32> to vector<1x64xf32>
    %8 = vector.broadcast %7 : vector<1x64xf32> to vector<16x64xf32>
    %9 = arith.addf %5, %8 : vector<16x64xf32>
    %c0_8 = arith.constant 0 : index
    %c0_9 = arith.constant 0 : index
    %c0_10 = arith.constant 0 : index
    %10 = vector.load %arg4[%c0_8, %c0_9, %c0_10] : memref<1x128x64xbf16, #tpu.memory_space<vmem>>, vector<1x128x64xbf16>
    %11 = vector.shape_cast %10 : vector<1x128x64xbf16> to vector<128x64xbf16>
    %cst_11 = arith.constant dense<0.000000e+00> : vector<16x64xf32>
    %12 = tpu.matmul %2, %11, %cst_11 {dimension_numbers = #tpu.dot_dimension_numbers<[1], [0], [0], [1], [0, 0, 1, 1], [], []>} : vector<16x128xbf16>, vector<128x64xbf16>, vector<16x64xf32> -> vector<16x64xf32>
    %c0_12 = arith.constant 0 : index
    %c0_13 = arith.constant 0 : index
    %c0_14 = arith.constant 0 : index
    %13 = vector.load %arg7[%c0_12, %c0_13, %c0_14] : memref<1x1x64xf32, #tpu.memory_space<vmem>>, vector<1x1x64xf32>
    %14 = vector.shape_cast %13 : vector<1x1x64xf32> to vector<1x64xf32>
    %15 = vector.broadcast %14 : vector<1x64xf32> to vector<16x64xf32>
    %16 = arith.addf %12, %15 : vector<16x64xf32>
    %c0_15 = arith.constant 0 : index
    %c0_16 = arith.constant 0 : index
    %c0_17 = arith.constant 0 : index
    %17 = vector.load %arg5[%c0_15, %c0_16, %c0_17] : memref<1x128x64xbf16, #tpu.memory_space<vmem>>, vector<1x128x64xbf16>
    %18 = vector.shape_cast %17 : vector<1x128x64xbf16> to vector<128x64xbf16>
    %cst_18 = arith.constant dense<0.000000e+00> : vector<16x64xf32>
    %19 = tpu.matmul %2, %18, %cst_18 {dimension_numbers = #tpu.dot_dimension_numbers<[1], [0], [0], [1], [0, 0, 1, 1], [], []>} : vector<16x128xbf16>, vector<128x64xbf16>, vector<16x64xf32> -> vector<16x64xf32>
    %c0_19 = arith.constant 0 : index
    %c0_20 = arith.constant 0 : index
    %c0_21 = arith.constant 0 : index
    %20 = vector.load %arg8[%c0_19, %c0_20, %c0_21] : memref<1x1x64xf32, #tpu.memory_space<vmem>>, vector<1x1x64xf32>
    %21 = vector.shape_cast %20 : vector<1x1x64xf32> to vector<1x64xf32>
    %22 = vector.broadcast %21 : vector<1x64xf32> to vector<16x64xf32>
    %23 = arith.addf %19, %22 : vector<16x64xf32>
    %24 = arith.truncf %9 : vector<16x64xf32> to vector<16x64xbf16>
    %25 = arith.truncf %16 : vector<16x64xf32> to vector<16x64xbf16>
    %cst_22 = arith.constant dense<0.000000e+00> : vector<16x16xf32>
    %26 = tpu.matmul %24, %25, %cst_22 {dimension_numbers = #tpu.dot_dimension_numbers<[1], [1], [0], [0], [0, 0, 1, 0], [], []>} : vector<16x64xbf16>, vector<16x64xbf16>, vector<16x16xf32> -> vector<16x16xf32>
    %cst_23 = arith.constant 1.250000e-01 : f32
    %27 = vector.broadcast %cst_23 : f32 to vector<16x16xf32>
    %28 = arith.mulf %26, %27 : vector<16x16xf32>
    %cst_24 = arith.constant dense<0xFF800000> : vector<16xf32>
    %29 = vector.multi_reduction <maximumf>, %28, %cst_24 [1] : vector<16x16xf32> to vector<16xf32>
    %30 = vector.shape_cast %29 : vector<16xf32> to vector<16x1xf32>
    %31 = vector.broadcast %30 : vector<16x1xf32> to vector<16x16xf32>
    %32 = arith.subf %28, %31 : vector<16x16xf32>
    %33 = math.exp %32 : vector<16x16xf32>
    %cst_25 = arith.constant dense<0.000000e+00> : vector<16xf32>
    %34 = vector.multi_reduction <add>, %33, %cst_25 [1] : vector<16x16xf32> to vector<16xf32>
    %35 = vector.shape_cast %34 : vector<16xf32> to vector<16x1xf32>
    %36 = tpu.reciprocal %35 {approx = true} : vector<16x1xf32> -> vector<16x1xf32>
    %37 = vector.broadcast %36 : vector<16x1xf32> to vector<16x16xf32>
    %38 = arith.mulf %33, %37 : vector<16x16xf32>
    %39 = arith.truncf %38 : vector<16x16xf32> to vector<16x16xbf16>
    %40 = arith.truncf %23 : vector<16x64xf32> to vector<16x64xbf16>
    %cst_26 = arith.constant dense<0.000000e+00> : vector<16x64xf32>
    %41 = tpu.matmul %39, %40, %cst_26 {dimension_numbers = #tpu.dot_dimension_numbers<[1], [0], [0], [1], [0, 0, 1, 1], [], []>} : vector<16x16xbf16>, vector<16x64xbf16>, vector<16x64xf32> -> vector<16x64xf32>
    %c0_27 = arith.constant 0 : index
    %c0_28 = arith.constant 0 : index
    %c0_29 = arith.constant 0 : index
    %c0_30 = arith.constant 0 : index
    %42 = vector.load %arg9[%c0_27, %c0_28, %c0_29, %c0_30] : memref<1x1x16x64xf32, #tpu.memory_space<vmem>>, vector<1x1x16x64xf32>
    %43 = vector.shape_cast %42 : vector<1x1x16x64xf32> to vector<16x64xf32>
    %44 = vector.shape_cast %41 : vector<16x64xf32> to vector<1x1x16x64xf32>
    tpu.vector_store %arg9[%c0_27, %c0_28, %c0_29, %c0_30], %44 {strides = array<i32>} : memref<1x1x16x64xf32, #tpu.memory_space<vmem>>, vector<1x1x16x64xf32>,
    return
  }
  func.func @transform_0(%arg0: i32, %arg1: i32) -> (i32, i32, i32) {
    %c0_i32 = arith.constant 0 : i32
    %c0_i32_0 = arith.constant 0 : i32
    %c0_i32_1 = arith.constant 0 : i32
    return %arg0, %c0_i32, %c0_i32_0 : i32, i32, i32
  }
  func.func @transform_1(%arg0: i32, %arg1: i32) -> (i32, i32, i32) {
    %c0_i32 = arith.constant 0 : i32
    %c0_i32_0 = arith.constant 0 : i32
    %c0_i32_1 = arith.constant 0 : i32
    return %arg1, %c0_i32, %c0_i32_0 : i32, i32, i32
  }
  func.func @transform_2(%arg0: i32, %arg1: i32) -> (i32, i32, i32) {
    %c0_i32 = arith.constant 0 : i32
    %c0_i32_0 = arith.constant 0 : i32
    %c0_i32_1 = arith.constant 0 : i32
    return %arg1, %c0_i32, %c0_i32_0 : i32, i32, i32
  }
  func.func @transform_3(%arg0: i32, %arg1: i32) -> (i32, i32, i32) {
    %c0_i32 = arith.constant 0 : i32
    %c0_i32_0 = arith.constant 0 : i32
    %c0_i32_1 = arith.constant 0 : i32
    return %arg1, %c0_i32, %c0_i32_0 : i32, i32, i32
  }
  func.func @transform_4(%arg0: i32, %arg1: i32) -> (i32, i32, i32) {
    %c0_i32 = arith.constant 0 : i32
    %c0_i32_0 = arith.constant 0 : i32
    %c0_i32_1 = arith.constant 0 : i32
    return %arg1, %c0_i32, %c0_i32_0 : i32, i32, i32
  }
  func.func @transform_5(%arg0: i32, %arg1: i32) -> (i32, i32, i32) {
    %c0_i32 = arith.constant 0 : i32
    %c0_i32_0 = arith.constant 0 : i32
    %c0_i32_1 = arith.constant 0 : i32
    return %arg1, %c0_i32, %c0_i32_0 : i32, i32, i32
  }
  func.func @transform_6(%arg0: i32, %arg1: i32) -> (i32, i32, i32) {
    %c0_i32 = arith.constant 0 : i32
    %c0_i32_0 = arith.constant 0 : i32
    %c0_i32_1 = arith.constant 0 : i32
    return %arg1, %c0_i32, %c0_i32_0 : i32, i32, i32
  }
  func.func @transform_7(%arg0: i32, %arg1: i32) -> (i32, i32, i32, i32) {
    %c0_i32 = arith.constant 0 : i32
    %c0_i32_0 = arith.constant 0 : i32
    %c0_i32_1 = arith.constant 0 : i32
    return %arg0, %arg1, %c0_i32, %c0_i32_0 : i32, i32, i32, i32
  }
}

</mosaic_0001>

<bundles_post_ra>
// kernel: tpu_custom_call.1
= control target key start
LH: loop header
LB: loop body
LE: loop exit
PB: predicated region body
PF: predicated region fallthrough
CT: control target
= control target key end

     0   :  { %s1654_s0 = inlined_call_operand.vmem [shape: f32[2,16,128], index: 0, kind: input, shape index: {}]   ;;  %s1655_s1 = inlined_call_operand.vmem [shape: bf16[2,128,64], index: 1, kind: input, shape index: {}]   ;;  %s1656_s2 = inlined_call_operand.vmem [shape: bf16[2,128,64], index: 2, kind: input, shape index: {}]   ;;  %s1657_s3 = inlined_call_operand.vmem [shape: bf16[2,128,64], index: 3, kind: input, shape index: {}]   ;;  %s1658_s4 = inlined_call_operand.vmem [shape: f32[2,1,64], index: 4, kind: input, shape index: {}]   ;;  %s1659_s5 = inlined_call_operand.vmem [shape: f32[2,1,64], index: 5, kind: input, shape index: {}]   ;;  %s1660_s6 = inlined_call_operand.vmem [shape: f32[2,1,64], index: 6, kind: input, shape index: {}]   ;;  %s1661_s7 = inlined_call_operand.hbm [shape: f32[2,2,16,64], index: 7, kind: output, shape index: {}]  }
   0x1   :  { %1662 = sst [smem:[#allocation5_spill]] %s1654_s0 }
   0x2   :  { %12 = vsyncpa [#allocation3], 0 }
   0x3   :  { %14 = vsyncpa [#allocation3 + $0x1], 0  ;;  %s1415_s24 = smov 0   ;;  %s1417_s25 = smov 0  }
   0x4   :  { %s1419_s26 = smov 0   ;;  %s1421_s27 = smov 0  }
   0x5   :  { %s1423_s28 = smov 0   ;;  %s1425_s29 = smov 0  }
   0x6   :  { %s1427_s30 = smov 0   ;;  %s1429_s8 = smov 0  }
   0x7 LB: > { %s1011_s9 = sadd.s32 4294967295, %s1368_s8   ;;  %s1012_s10 = sadd.s32 4294967294, %s1368_s8   ;;  %s1368_s8 = sphi %s1429_s8, %s20_s8   ;;  %s1364_s30 = sphi %s1427_s30, %s1672_s30   ;;  %s1360_s29 = sphi %s1425_s29, %s1671_s29   ;;  %s1356_s28 = sphi %s1423_s28, %s1670_s28   ;;  %s1352_s27 = sphi %s1421_s27, %s1669_s27   ;;  %s1348_s26 = sphi %s1419_s26, %s1668_s26   ;;  %s1344_s25 = sphi %s1417_s25, %s1667_s25   ;;  %s1340_s24 = sphi %s1415_s24, %s1666_s24  }
   0x8   : > { %s29_s11 = sadd.s32 1, %s1360_s29  ;;  %s32_s12 = sadd.s32 1, %s1364_s30 }
   0x9   : > { %p30_p0 = scmp.ge.s32.totalorder %s29_s11, 2  ;;  %p233_p1 = scmp.ne.s32.totalorder %s1348_s26, %s1344_s25 }
   0xa   : > { %p234_p2 = scmp.eq.s32.totalorder %s1011_s9, 3  ;;  %p239_p5 = scmp.ne.s32.totalorder %s1344_s25, %s1340_s24 }
   0xb   : > { %s1674_s11 = smov (%p30_p0, %s29_s11), 0  ;;  %s1676_s12 = smov (!%p30_p0, %s32_s12), %s1364_s30 }
   0xc   : > { %s219_s13 = ssub.s32 %s1360_s29, %s1674_s11  ;;  %p1466_p3 = por %p234_p2, %p233_p1 }
   0xd   : > { %p34_p4 = scmp.ge.s32.totalorder %s1676_s12, 2  ;;  %p240_p6 = scmp.eq.s32.totalorder %s1012_s10, 3 }
   0xe   : > { %p1015_p7 = scmp.ge.s32.totalorder %s1368_s8, 1  ;;  %p308_p9 = scmp.lt.s32.totalorder %s1368_s8, 5 }
   0xf   : > { %s1678_s12 = smov (%p34_p4, %s1676_s12), 0  ;;  %p1475_p8 = por %p240_p6, %p239_p5 }
  0x10   : > { %s218_s16 = ssub.s32 %s1364_s30, %s1678_s12  ;;  %s223_s17 = sadd.s32 1, %s1348_s26 }
  0x11   : > { %s220_s18 = sor.u32 %s219_s13, %s218_s16  ;;  %p309_p10 = pnand %p1015_p7, %p308_p9 }
  0x12   : > { %p221_p11 = scmp.eq.s32.totalorder %s220_s18, 0  ;;  %p369_p12 = scmp.lt.s32.totalorder (!%p309_p10), %s1352_s27, 1  ;;  %v1370_v0 = vmov (!%p309_p10), 0.0   ;;  %vm1371_vm0 = vmmov (!%p309_p10), 0   ;;  %vm735_vm1 = vcmask (!%p309_p10), 523264   ;;  %vm785_vm2 = vcmask (!%p309_p10), 130048  }
  0x13   : > { %312 = sbr.rel (%p309_p10) target bundleno = 1051 (0x41b), region = 48  ;;  %1115 = vmatprep.subr.bf16.mxu1 (!%p309_p10), %v1370_v0  ;;  %1095 = vmatprep.subr.bf16.mxu0 (!%p309_p10), %v1370_v0  ;;  %p364_p13 = scmp.lt.s32.totalorder (!%p309_p10), %s1356_s28, 1 }
  0x14   : > { %s1484_s19 = scalar_select %p221_p11, %s1348_s26, %s223_s17  }
  0x15   : > { %1131 = vmatprep.mubr.msk.bf16.mxu1 (!%p309_p10), %vm1371_vm0, %v1370_v0  ;;  %1111 = vmatprep.mubr.msk.bf16.mxu0 (!%p309_p10), %vm1371_vm0, %v1370_v0  ;;  %s1665_s0 = sld [smem:[#allocation5_spill]] (!%p309_p10) }
  0x1a   : > { %s1490_s20 = scalar_select %p369_p12, %s1352_s27, 1 }
  0x1b   : > { %s365_s17 = scalar_select %p364_p13, %s1356_s28, 1 }
  0x1c   : > { %s1061_s21 = sshll.u32 %s1490_s20, 6 }
  0x1d   : > { %s1500_s9 = scalar_lea.vmem %s1656_s2, %s1061_s21  ;;  %s1506_s16 = scalar_lea.vmem %s1655_s1, %s1061_s21 }
  0x1e   : > { %v1242_v1 = vld [vmem:[%s1500_s9] sm:$0xff]   ;;  %v1243_v2 = vld [vmem:[%s1500_s9 + $0x8] sm:$0xff]   ;;  %v1245_v5 = vld [vmem:[%s1500_s9 + $0x10] sm:$0xff]   ;;  %s1527_s23 = scalar_lea.vmem %s1657_s3, %s1061_s21  ;;  %s1060_s10 = sshll.u32 %s365_s17, 4 }
  0x1f   : > { %1116 = vmatpush3.bf16.msra.mxu1 %v1242_v1  ;;  %v1244_v3 = vld [vmem:[%s1506_s16] sm:$0xff]   ;;  %v1246_v4 = vld [vmem:[%s1506_s16 + $0x8] sm:$0xff]   ;;  %v1248_v6 = vld [vmem:[%s1506_s16 + $0x10] sm:$0xff]   ;;  %s368_s18 = scalar_lea.vmem %s1665_s0, %s1060_s10  ;;  %s386_s21 = scalar_lea.vmem %s1658_s4, %s1490_s20 }
  0x20   : > { %1117 = vmatprep.subr.bf16.mxu1 %v1370_v0  ;;  %1096 = vmatpush3.bf16.msra.mxu0 %v1244_v3  ;;  %v1247_v7 = vld [vmem:[%s1500_s9 + $0x18] sm:$0xff]   ;;  %v1249_v9 = vld [vmem:[%s1500_s9 + $0x20] sm:$0xff]   ;;  %v1251_v10 = vld [vmem:[%s1500_s9 + $0x28] sm:$0xff]   ;;  %s1055_s17 = sshll.u32 %s1352_s27, 1 }
  0x21   : > { %1097 = vmatprep.subr.bf16.mxu0 %v1370_v0  ;;  %v1250_v8 = vld [vmem:[%s1506_s16 + $0x18] sm:$0xff]   ;;  %v1252_v11 = vld [vmem:[%s1506_s16 + $0x20] sm:$0xff]   ;;  %v1254_v12 = vld [vmem:[%s1506_s16 + $0x28] sm:$0xff]  }
  0x22   : > { %v1253_v13 = vld [vmem:[%s1500_s9 + $0x30] sm:$0xff]   ;;  %v1255_v15 = vld [vmem:[%s1500_s9 + $0x38] sm:$0xff]   ;;  %v394_v16 = vld [vmem:[%s368_s18] sm:$0xff] }
  0x23   : > { %1118 = vmatpush3.bf16.msra.mxu1 %v1243_v2  ;;  %v1256_v14 = vld [vmem:[%s1506_s16 + $0x30] sm:$0xff]   ;;  %v395_v17 = vld [vmem:[%s368_s18 + $0x8] sm:$0xff]  ;;  %v1257_v18 = vld [vmem:[%s1506_s16 + $0x38] sm:$0xff]   ;;  %s389_s16 = scalar_lea.vmem %s1659_s5, %s1490_s20  ;;  %s392_s18 = scalar_lea.vmem %s1660_s6, %s1490_s20 }
  0x24   : > { %1119 = vmatprep.subr.bf16.mxu1 %v1370_v0  ;;  %1098 = vmatpush3.bf16.msra.mxu0 %v1246_v4  ;;  %v396_v19 = vpack.c.bf16 %v395_v17, %v394_v16  ;;  %v1034_v20 = vld [vmem:[%s389_s16] ss:$0 sm:$0xff]  ;;  %v1259_v38 = vld [vmem:[%s1527_s23 + $0x8] sm:$0xff]   ;;  %v1260_v39 = vld [vmem:[%s1527_s23 + $0x10] sm:$0xff]   ;;  %s361_s20 = sand.u32 1, %s1344_s25   ;;  %s1056_s16 = sshll.u32 %s1356_s28, 2 }
  0x25   : > { %1099 = vmatprep.subr.bf16.mxu0 %v1370_v0  ;;  %v1025_v22 = vld [vmem:[%s386_s21] ss:$0 sm:$0xff]  ;;  %v1261_v40 = vld [vmem:[%s1527_s23 + $0x18] sm:$0xff]   ;;  %v1263_v42 = vld [vmem:[%s1527_s23 + $0x28] sm:$0xff]   ;;  %s1016_s9 = sshll.u32 %s361_s20, 4  ;;  %s869_s22 = sadd.s32 %s1056_s16, %s1055_s17 }
  0x26   : > { %v1258_v37 = vld [vmem:[%s1527_s23] sm:$0xff]   ;;  %v1264_v43 = vld [vmem:[%s1527_s23 + $0x30] sm:$0xff]   ;;  %v1265_v44 = vld [vmem:[%s1527_s23 + $0x38] sm:$0xff]   ;;  %s363_s10 = scalar_lea.vmem [#allocation2], %s1016_s9  ;;  %s1602_s27 = scalar_lea.sflag [#allocation3], %s361_s20 }
  0x27   : > { %1120 = vmatpush3.bf16.msra.mxu1 %v1245_v5  ;;  %v1262_v41 = vld [vmem:[%s1527_s23 + $0x20] sm:$0xff]   ;;  %s872_s21 = sshll.u32 %s363_s10, 4  ;;  %s1057_s23 = sshll.u32 %s869_s22, 7  ;;  %s1593_s21 = int_to_ptr.vmem [resolvable:$true] %s872_s21 }
  0x28   : > { %1121 = vmatprep.subr.bf16.mxu1 %v1370_v0  ;;  %1100 = vmatpush3.bf16.msra.mxu0 %v1248_v6  ;;  %v1043_v2 = vld [vmem:[%s392_s18] ss:$0 sm:$0xff]  ;;  %s1599_s0 = scalar_lea.hbm %s1661_s7, %s1057_s23  ;;  %s1274_s28 = scalar_lea.vmem %s1593_s21, 256 }
  0x29   : > { %1101 = vmatprep.subr.bf16.mxu0 %v1370_v0  ;;  %p1275_p0 = scmp.ne.s32.totalorder %s1593_s21, %s1274_s28  ;;  %s1372_s9 = smov [#allocation2]  }
  0x2a   : > { %s1278_s17 = sshll.u32 %s1372_s9, 4  ;;  %s1279_s17 = int_to_ptr.vmem [resolvable:$false] %s1278_s17 }
  0x2b   : > { %1122 = vmatpush3.bf16.msra.mxu1 %v1247_v7  ;;  %p1276_p1 = pnand %p1275_p0, %p1466_p3  ;;  %s1280_s16 = scalar_lea.vmem %s1279_s17, 512 }
  0x2c   : > { %1123 = vmatprep.subr.bf16.mxu1 %v1370_v0  ;;  %1102 = vmatpush3.bf16.msra.mxu0 %v1250_v8  ;;  %p1281_p4 = scmp.lt.s32.totalorder %s1593_s21, %s1279_s17  ;;  %p1282_p5 = scmp.lt.s32.totalorder %s1280_s16, %s1274_s28 }
  0x2d   : > { %1103 = vmatprep.subr.bf16.mxu0 %v1370_v0  ;;  %p1277_p2 = pneg %p1276_p1 }
  0x2e   : > { %p1283_p6 = por %p1282_p5, %p1281_p4 }
  0x2f   : > { %1124 = vmatpush3.bf16.msra.mxu1 %v1249_v9 }
  0x30   : > { %1125 = vmatprep.subr.bf16.mxu1 %v1370_v0  ;;  %1104 = vmatpush3.bf16.msra.mxu0 %v1252_v11  ;;  %p1284_p7 = pnand %p1283_p6, %p1277_p2 }
  0x31   : > { %1105 = vmatprep.subr.bf16.mxu0 %v1370_v0 }
  0x33   : > { %1126 = vmatpush3.bf16.msra.mxu1 %v1251_v10 }
  0x34   : > { %1127 = vmatprep.subr.bf16.mxu1 %v1370_v0  ;;  %1106 = vmatpush3.bf16.msra.mxu0 %v1254_v12 }
  0x35   : > { %1107 = vmatprep.subr.bf16.mxu0 %v1370_v0 }
  0x37   : > { %1128 = vmatpush3.bf16.msra.mxu1 %v1253_v13 }
  0x38   : > { %1129 = vmatprep.subr.bf16.mxu1 %v1370_v0  ;;  %1108 = vmatpush3.bf16.msra.mxu0 %v1256_v14 }
  0x39   : > { %1109 = vmatprep.subr.bf16.mxu0 %v1370_v0 }
  0x3b   : > { %1130 = vmatpush3.bf16.msra.mxu1 %v1255_v15 }
  0x3c   : > { %1155 = vmatprep.subr.bf16.mxu1 %v1370_v0  ;;  %1110 = vmatpush3.bf16.msra.mxu0 %v1257_v18 }
  0x3d   : > { %1135 = vmatprep.subr.bf16.mxu0 %v1370_v0 }
  0x3e   : > { %1132 = vmatmul.mubr.bf16.vlgmr.msra.gmra.mrb[0].mxu1 %v396_v19 }
  0x3f   : > { %1157 = vmatprep.mubr.msk.bf16.mxu1 %vm1371_vm0, %v1370_v0  ;;  %1112 = vmatmul.mubr.bf16.vlgmr.msra.gmra.mrb[0].mxu0 %v396_v19 }
  0x40   : > { %1151 = vmatprep.mubr.msk.bf16.mxu0 %vm1371_vm0, %v1370_v0  ;;  %1136 = vmatpush3.bf16.msra.mxu0 %v1258_v37 }
  0x41   : > { %1137 = vmatprep.subr.bf16.mxu0 %v1370_v0 }
  0x44   : > { %1138 = vmatpush3.bf16.msra.mxu0 %v1259_v38 }
  0x45   : > { %1139 = vmatprep.subr.bf16.mxu0 %v1370_v0 }
  0x48   : > { %1140 = vmatpush3.bf16.msra.mxu0 %v1260_v39 }
  0x49   : > { %1141 = vmatprep.subr.bf16.mxu0 %v1370_v0 }
  0x4c   : > { %1142 = vmatpush3.bf16.msra.mxu0 %v1261_v40 }
  0x4d   : > { %1143 = vmatprep.subr.bf16.mxu0 %v1370_v0 }
  0x50   : > { %1144 = vmatpush3.bf16.msra.mxu0 %v1262_v41 }
  0x51   : > { %1145 = vmatprep.subr.bf16.mxu0 %v1370_v0 }
  0x54   : > { %1146 = vmatpush3.bf16.msra.mxu0 %v1263_v42 }
  0x55   : > { %1147 = vmatprep.subr.bf16.mxu0 %v1370_v0 }
  0x58   : > { %1148 = vmatpush3.bf16.msra.mxu0 %v1264_v43 }
  0x59   : > { %1149 = vmatprep.subr.bf16.mxu0 %v1370_v0 }
  0x5c   : > { %1150 = vmatpush3.bf16.msra.mxu0 %v1265_v44 }
  0x5f   : > { %1152 = vmatmul.mubr.bf16.vlgmr.msra.gmra.mrb[4].mxu0 %v396_v19 }
 0x111   : > { %v614_v21 = vpop.f32.mrb[0].mxu1 }
 0x112   : > { %v1133_v23 = vpop.f32.mrb[1].mxu1  ;;  %v502_v25 = vpop.f32.mrb[0].mxu0  ;;  %v615_v26 = vadd.f32 %v1034_v20, %v614_v21 }
 0x113   : > { %v617_v24 = vpop.f32.mrb[2].mxu1  ;;  %v503_v29 = vadd.f32 %v1025_v22, %v502_v25  ;;  %v1113_v30 = vpop.f32.mrb[1].mxu0 }
 0x114   : > { %v618_v27 = vadd.f32 %v1034_v20, %v617_v24  ;;  %v1134_v28 = vpop.f32.mrb[3].mxu1  ;;  %v505_v31 = vpop.f32.mrb[2].mxu0 }
 0x115   : > { %v506_v33 = vadd.f32 %v1025_v22, %v505_v31  ;;  %v1114_v34 = vpop.f32.mrb[3].mxu0 }
 0x116   : > { %v734_v32 = vpack.c.bf16 %v618_v27, %v615_v26 }
 0x117   : > { %v733_v35 = vpack.c.bf16 %v506_v33, %v503_v29 }
 0x118   : > { %v740_v36 = vsel %vm735_vm1, %v734_v32, 0 }
 0x119   : > { %1156 = vmatpush3.bf16.xpose.msra.mxu1 %v740_v36 }
 0x11a   : > { %1161 = vmatprep.subr.bf16.mxu1 %v1370_v0 }
 0x120   : > { %1158 = vmatmul.mubr.msk.bf16.vlgmr.msra.gmra.mrb[4].mxu1 %vm735_vm1, %v733_v35 }
 0x121   : > { %1163 = vmatprep.mubr.msk.bf16.mxu1 %vm1371_vm0, %v1370_v0 }
 0x132   : > { %v726_v63 = vpop.f32.mrb[4].mxu0 }
 0x133   : > { %v1153_v0 = vpop.f32.mrb[5].mxu0  ;;  %v727_v4 = vadd.f32 %v1043_v2, %v726_v63 }
 0x134   : > { %v729_v1 = vpop.f32.mrb[6].mxu0 }
 0x135   : > { %v1154_v3 = vpop.f32.mrb[7].mxu0  ;;  %v730_v5 = vadd.f32 %v1043_v2, %v729_v1 }
 0x137   : > { %v809_v6 = vpack.c.bf16 %v730_v5, %v727_v4 }
 0x139   : > { %1162 = vmatpush3.bf16.msra.mxu1 %v809_v6 }
 0x1f3   : > { %v776_v45 = vpop.f32.mrb[4].mxu1 }
 0x1f4   : > { %v783_v46 = vmul.f32 0.125, %v776_v45  ;;  %v1159_v47 = vpop.f32.mrb[5].mxu1 }
 0x1f5   : > { %v779_v48 = vpop.f32.mrb[6].mxu1 }
 0x1f6   : > { %v784_v49 = vmul.f32 0.125, %v779_v48  ;;  %v1160_v50 = vpop.f32.mrb[7].mxu1  ;;  %v786_v51 = vsel %vm785_vm2, %v783_v46, -inf }
 0x1f7   : > { %787 = vmax.xlane.f32.xlu0 %v786_v51 }
 0x1f8   : > { %v789_v52 = vsel %vm785_vm2, %v784_v49, -inf }
 0x1fb   : > { %790 = vmax.xlane.f32.xlu0 %v789_v52 }
 0x284   : > { %v788_v53 = vpop.xlane.xlu0 %787 }
 0x285   : > { %v792_v54 = vsub.f32 %v783_v46, %v788_v53 }
 0x287   : > { %v794_v55 = vmul.f32 1.442695, %v792_v54 }
 0x288   : > { %v791_v56 = vpop.xlane.xlu0 %790 }
 0x289   : > { %1266 = vpow2.f32 %v794_v55  ;;  %v793_v57 = vsub.f32 %v784_v49, %v791_v56 }
 0x28b   : > { %v796_v58 = vmul.f32 1.442695, %v793_v57 }
 0x28d   : > { %1268 = vpow2.f32 %v796_v58 }
 0x293   : > { %v1267_v59 = vpop.eup %1266 }
 0x294   : > { %v798_v60 = vsel %vm785_vm2, %v1267_v59, 0.0 }
 0x295   : > { %799 = vadd.xlane.f32.xlu1 %v798_v60 }
 0x297   : > { %v1269_v61 = vpop.eup %1268 }
 0x298   : > { %v801_v62 = vsel %vm785_vm2, %v1269_v61, 0.0 }
 0x299   : > { %802 = vadd.xlane.f32.xlu1 %v801_v62 }
 0x322   : > { %v800_v7 = vpop.xlane.xlu1 %799 }
 0x323   : > { %1270 = vrcp.f32 %v800_v7 }
 0x326   : > { %v803_v8 = vpop.xlane.xlu1 %802 }
 0x327   : > { %1272 = vrcp.f32 %v803_v8 }
 0x32d   : > { %v1271_v9 = vpop.eup %1270 }
 0x32e   : > { %v806_v11 = vmul.f32 %v1271_v9, %v1267_v59 }
 0x331   : > { %v1273_v10 = vpop.eup %1272 }
 0x332   : > { %v807_v12 = vmul.f32 %v1273_v10, %v1269_v61 }
 0x334   : > { %v808_v13 = vpack.c.bf16 %v807_v12, %v806_v11 }
 0x336   : > { %1164 = vmatmul.mubr.msk.bf16.vlgmr.msra.gmra.mrb[8].mxu1 %vm785_vm2, %v808_v13 }
 0x409   : > { %v847_v14 = vpop.f32.mrb[8].mxu1 }
 0x40a   : > { %854 = vst.msk [vmem:[%s363_s10] sm:$0xff] %vm735_vm1, %v847_v14  ;;  %v1165_v15 = vpop.f32.mrb[9].mxu1 }
 0x40b   : > { %v850_v16 = vpop.f32.mrb[10].mxu1 }
 0x40c   : > { %855 = vst.msk [vmem:[%s363_s10 + $0x8] sm:$0xff] %vm735_vm1, %v850_v16  ;;  %v1166_v17 = vpop.f32.mrb[11].mxu1 }
 0x40d   : > { %1287 = shalt.err (!%p1284_p7)
}
 0x40e   : > { %s1288_s20 = scalar_lea.hbm %s1599_s0, 256  ;;  %s1292_s23 = scalar_lea.hbm %s1661_s7, 1024 }
 0x40f   : > { %p1289_p9 = scmp.ne.s32.totalorder %s1599_s0, %s1288_s20  ;;  %p1293_p12 = scmp.lt.u32.totalorder %s1599_s0, %s1661_s7 }
 0x410   : > { %p1294_p13 = scmp.lt.u32.totalorder %s1292_s23, %s1288_s20  ;;  %p1296_p1 = scmp.lt.u32.totalorder %s1288_s20, %s1599_s0 }
 0x411   : > { %p1290_p10 = pnand %p1289_p9, %p1466_p3 }
 0x412   : > { %p1295_p0 = por %p1294_p13, %p1293_p12 }
 0x413   : > { %p1291_p11 = pneg %p1290_p10 }
 0x414   : > { %p1297_p2 = por %p1296_p1, %p1295_p0 }
 0x416   : > { %p1298_p4 = pnand %p1297_p2, %p1291_p11 }
 0x418   : > { %1301 = shalt.err (!%p1298_p4)
}
 0x419   : > { %s1373_s28 = smov 128   ;;  %s1374_s9 = smov 8  }
 0x41a   : > { %1167 = dma.vmem_to_hbm [thread:$0]  (%p1466_p3), %s1593_s21, 256, %s1599_s0, %s1602_s27, %s1373_s28, %s1373_s28, %s1374_s9  }
 0x41b PF: > { %p1173_p5 = scmp.ge.s32.totalorder %s1368_s8, 2  ;;  %s887_s17 = sand.u32 1, %s1340_s24  }
 0x41c   : > { %s888_s16 = scalar_lea.sflag [#allocation3], %s887_s17 }
 0x41d   : > { %p1170_p6 = pnand %p1173_p5, %p1475_p8 }
 0x41f   : > { %1335 = dma.done.wait (!%p1170_p6), %s888_s16, 256  }
 0x420   : > { %1337 = vsyncadd (!%p1170_p6), %s888_s16, 4294967040  ;;  %s20_s8 = sadd.s32 1, %s1368_s8   ;;  %s1666_s24 = smov %s1344_s25 }
 0x421   : > { %p17_p7 = scmp.ge.s32.totalorder %s20_s8, 6   ;;  %s1667_s25 = smov %s1348_s26 }
 0x422   : > { %s1668_s26 = smov %s1484_s19  ;;  %s1669_s27 = smov %s1360_s29 }
 0x423   : > { %s1670_s28 = smov %s1364_s30  ;;  %s1671_s29 = smov %s1674_s11 }
 0x424   : > { %s1672_s30 = smov %s1678_s12  ;;  %19 = sbr.rel (!%p17_p7) target bundleno = 7 (0x7), region = 101 }
 0x42b   :  { %893 = vsyncpa [#allocation3], 1 }
 0x42c   :  { %895 = vsyncpa [#allocation3 + $0x1], 1 }

</bundles_post_ra>
